<compile_context>
chip_gen: v7x
topology: tpu7x:2x2x1
jax: 0.10.0
libtpu: 0.0.40
codegen_flags: <defaults>
</compile_context>

<pallas_src>
import jax
import jax.numpy as jnp
from jax.experimental import pallas as pl
from jax.experimental.pallas import tpu as pltpu

input_size = 20    # = window_size in the original script
hidden_size = 64
output_size = 1


def _round_up(x, m):
    return (x + m - 1) // m * m


def _mlp_kernel(xt_ref, w1t_ref, b1_ref, w2t_ref, b2_ref, w3_ref, b3_ref, o_ref):
    """One batch tile of the 3-layer MLP, feature-major (batch on lanes)."""
    xt = xt_ref[...]                                          # (IN, TB) bf16
    # fc1 + ReLU : (H, IN) @ (IN, TB) -> (H, TB), f32 accumulate on the MXU.
    h1 = jnp.dot(w1t_ref[...], xt, preferred_element_type=jnp.float32)
    h1 = jnp.maximum(h1 + b1_ref[...], 0.0)
    # fc2 + ReLU : (H, H) @ (H, TB) -> (H, TB).
    h2 = jnp.dot(w2t_ref[...], h1.astype(jnp.bfloat16),
                 preferred_element_type=jnp.float32)
    h2 = jnp.maximum(h2 + b2_ref[...], 0.0)
    # fc3 (N=1): VPU multiply + sublane (XLU) reduce -> lane-dense (1, TB) store.
    out = jnp.sum(h2 * w3_ref[...], axis=0, keepdims=True) + b3_ref[0, 0]
    o_ref[...] = out.astype(o_ref.dtype)


def stock_predictor_forward(x, params, block_b=2048):
    """x: [B, input_size] float32 -> [B, output_size] float32."""
    w1, b1, w2, b2, w3, b3 = params
    B = x.shape[0]

    # Batch tile on the lane axis: multiple of 128, capped at `block_b`.
    tb = min(_round_up(block_b, 128), _round_up(max(B, 1), 128))
    b_pad = _round_up(B, tb)
    num_tiles = b_pad // tb

    if b_pad != B:
        x = jnp.pad(x, ((0, b_pad - B), (0, 0)))

    # Layout plumbing (one fused XLA transpose+cast; bf16 halves x's HBM read).
    xt = x.T.astype(jnp.bfloat16)              # (IN, B_pad)
    w1t = w1.T.astype(jnp.bfloat16)            # (H, IN)
    w2t = w2.T.astype(jnp.bfloat16)            # (H, H)
    b1c = b1.T                                 # (H, 1) f32
    b2c = b2.T                                 # (H, 1) f32
    w3c = w3                                   # (H, 1) f32 (VPU path stays f32)
    b3s = b3.reshape(1, 1)                     # (1, 1) f32 -> SMEM

    const = lambda i: (0, 0)                   # params resident across steps
    out2d = pl.pallas_call(
        _mlp_kernel,
        out_shape=jax.ShapeDtypeStruct((1, b_pad), jnp.float32),
        grid=(num_tiles,),
        in_specs=[
            pl.BlockSpec((input_size, tb), lambda i: (0, i)),       # x tile
            pl.BlockSpec((hidden_size, input_size), const),         # w1^T
            pl.BlockSpec((hidden_size, 1), const),                  # b1
            pl.BlockSpec((hidden_size, hidden_size), const),        # w2^T
            pl.BlockSpec((hidden_size, 1), const),                  # b2
            pl.BlockSpec((hidden_size, 1), const),                  # w3
            pl.BlockSpec(memory_space=pltpu.MemorySpace.SMEM),      # b3 scalar
        ],
        out_specs=pl.BlockSpec((1, tb), lambda i: (0, i)),          # lane-dense
        compiler_params=pltpu.CompilerParams(
            dimension_semantics=("parallel",)),
    )(xt, w1t, b1c, w2t, b2c, w3c, b3s)

    return out2d[0, :B].reshape(B, output_size)


def init_params(key):
    """Deterministic init mimicking PyTorch nn.Linear default U(-1/sqrt(fan_in), +)."""
    def linear(key, fan_in, fan_out):
        kw, kb = jax.random.split(key)
        bound = 1.0 / jnp.sqrt(fan_in)
        # Stored as [in, out] so the math is x @ W (== x @ W_torch.T).
        w = jax.random.uniform(kw, (fan_in, fan_out), jnp.float32, -bound, bound)
        b = jax.random.uniform(kb, (1, fan_out), jnp.float32, -bound, bound)
        return w, b

    k1, k2, k3 = jax.random.split(key, 3)
    w1, b1 = linear(k1, input_size, hidden_size)
    w2, b2 = linear(k2, hidden_size, hidden_size)
    w3, b3 = linear(k3, hidden_size, output_size)
    return (w1, b1, w2, b2, w3, b3)


def _reference_forward(x, params):
    """Plain-JAX reference with the same bf16-matmul / f32-accumulate recipe."""
    w1, b1, w2, b2, w3, b3 = params
    h1 = jnp.maximum(
        jnp.dot(x.astype(jnp.bfloat16), w1.astype(jnp.bfloat16),
                preferred_element_type=jnp.float32) + b1, 0.0)
    h2 = jnp.maximum(
        jnp.dot(h1.astype(jnp.bfloat16), w2.astype(jnp.bfloat16),
                preferred_element_type=jnp.float32) + b2, 0.0)
    return jnp.dot(h2, w3, preferred_element_type=jnp.float32,
                   precision=jax.lax.Precision.HIGHEST) + b3


if __name__ == "__main__":
    key = jax.random.PRNGKey(0)
    k_params, k_x = jax.random.split(key)

    params = init_params(k_params)

    batch = 8
    x = jax.random.normal(k_x, (batch, input_size), dtype=jnp.float32)

    out = stock_predictor_forward(x, params)
    out = jax.block_until_ready(out)

    # Sanity check against a plain-JAX reference of the same (bf16/f32) math.
    ref = jax.block_until_ready(_reference_forward(x, params))
    assert out.shape == (batch, output_size)
    assert jnp.allclose(out, ref, atol=1e-3, rtol=1e-3)

    print("KERNEL_OK")
</pallas_src>

<mosaic_0001>
module attributes {stable_mosaic.version = 11 : i64} {
  func.func @_mlp_kernel(%arg0: i32, %arg1: memref<20x128xbf16, #tpu.memory_space<vmem>>, %arg2: memref<64x20xbf16, #tpu.memory_space<vmem>>, %arg3: memref<64x1xf32, #tpu.memory_space<vmem>>, %arg4: memref<64x64xbf16, #tpu.memory_space<vmem>>, %arg5: memref<64x1xf32, #tpu.memory_space<vmem>>, %arg6: memref<64x1xf32, #tpu.memory_space<vmem>>, %arg7: memref<1x1xf32, #tpu.memory_space<smem>>, %arg8: memref<1x128xf32, #tpu.memory_space<vmem>>) attributes {dimension_semantics = [#tpu.dimension_semantics<parallel>], iteration_bounds = array<i64: 1>, scalar_prefetch = 0 : i64, scratch_operands = 0 : i64, tpu.core_type = #tpu.core_type<tc>, window_params = [{transform_indices = @transform_0, window_bounds = array<i64: 20, 128>}, {pipeline_mode = #tpu.pipeline_mode<synchronous>, transform_indices = @transform_1, window_bounds = array<i64: 64, 20>}, {pipeline_mode = #tpu.pipeline_mode<synchronous>, transform_indices = @transform_2, window_bounds = array<i64: 64, 1>}, {pipeline_mode = #tpu.pipeline_mode<synchronous>, transform_indices = @transform_3, window_bounds = array<i64: 64, 64>}, {pipeline_mode = #tpu.pipeline_mode<synchronous>, transform_indices = @transform_4, window_bounds = array<i64: 64, 1>}, {pipeline_mode = #tpu.pipeline_mode<synchronous>, transform_indices = @transform_5, window_bounds = array<i64: 64, 1>}, {transform_indices = @transform_6, window_bounds = array<i64: 1, 1>}, {transform_indices = @transform_7, window_bounds = array<i64: 1, 128>}]} {
    %c0 = arith.constant 0 : index
    %c0_0 = arith.constant 0 : index
    %0 = vector.load %arg1[%c0, %c0_0] : memref<20x128xbf16, #tpu.memory_space<vmem>>, vector<20x128xbf16>
    %c0_1 = arith.constant 0 : index
    %c0_2 = arith.constant 0 : index
    %1 = vector.load %arg2[%c0_1, %c0_2] : memref<64x20xbf16, #tpu.memory_space<vmem>>, vector<64x20xbf16>
    %cst = arith.constant dense<0.000000e+00> : vector<64x128xf32>
    %2 = tpu.matmul %1, %0, %cst {dimension_numbers = #tpu.dot_dimension_numbers<[1], [0], [0], [1], [0, 0, 1, 1], [], []>} : vector<64x20xbf16>, vector<20x128xbf16>, vector<64x128xf32> -> vector<64x128xf32>
    %c0_3 = arith.constant 0 : index
    %c0_4 = arith.constant 0 : index
    %3 = vector.load %arg3[%c0_3, %c0_4] : memref<64x1xf32, #tpu.memory_space<vmem>>, vector<64x1xf32>
    %4 = vector.broadcast %3 : vector<64x1xf32> to vector<64x128xf32>
    %5 = arith.addf %2, %4 : vector<64x128xf32>
    %cst_5 = arith.constant 0.000000e+00 : f32
    %6 = vector.broadcast %cst_5 : f32 to vector<64x128xf32>
    %7 = arith.maximumf %5, %6 : vector<64x128xf32>
    %c0_6 = arith.constant 0 : index
    %c0_7 = arith.constant 0 : index
    %8 = vector.load %arg4[%c0_6, %c0_7] : memref<64x64xbf16, #tpu.memory_space<vmem>>, vector<64x64xbf16>
    %9 = arith.truncf %7 : vector<64x128xf32> to vector<64x128xbf16>
    %cst_8 = arith.constant dense<0.000000e+00> : vector<64x128xf32>
    %10 = tpu.matmul %8, %9, %cst_8 {dimension_numbers = #tpu.dot_dimension_numbers<[1], [0], [0], [1], [0, 0, 1, 1], [], []>} : vector<64x64xbf16>, vector<64x128xbf16>, vector<64x128xf32> -> vector<64x128xf32>
    %c0_9 = arith.constant 0 : index
    %c0_10 = arith.constant 0 : index
    %11 = vector.load %arg5[%c0_9, %c0_10] : memref<64x1xf32, #tpu.memory_space<vmem>>, vector<64x1xf32>
    %12 = vector.broadcast %11 : vector<64x1xf32> to vector<64x128xf32>
    %13 = arith.addf %10, %12 : vector<64x128xf32>
    %cst_11 = arith.constant 0.000000e+00 : f32
    %14 = vector.broadcast %cst_11 : f32 to vector<64x128xf32>
    %15 = arith.maximumf %13, %14 : vector<64x128xf32>
    %c0_12 = arith.constant 0 : index
    %c0_13 = arith.constant 0 : index
    %16 = vector.load %arg6[%c0_12, %c0_13] : memref<64x1xf32, #tpu.memory_space<vmem>>, vector<64x1xf32>
    %17 = vector.broadcast %16 : vector<64x1xf32> to vector<64x128xf32>
    %18 = arith.mulf %15, %17 : vector<64x128xf32>
    %cst_14 = arith.constant dense<0.000000e+00> : vector<128xf32>
    %19 = vector.multi_reduction <add>, %18, %cst_14 [0] : vector<64x128xf32> to vector<128xf32>
    %20 = vector.shape_cast %19 : vector<128xf32> to vector<1x128xf32>
    %c0_15 = arith.constant 0 : index
    %c0_16 = arith.constant 0 : index
    %21 = memref.load %arg7[%c0_15, %c0_16] : memref<1x1xf32, #tpu.memory_space<smem>>
    %22 = vector.broadcast %21 : f32 to vector<1x128xf32>
    %23 = arith.addf %20, %22 : vector<1x128xf32>
    %c0_17 = arith.constant 0 : index
    %c0_18 = arith.constant 0 : index
    %24 = vector.load %arg8[%c0_17, %c0_18] : memref<1x128xf32, #tpu.memory_space<vmem>>, vector<1x128xf32>
    tpu.vector_store %arg8[%c0_17, %c0_18], %23 {strides = array<i32>} : memref<1x128xf32, #tpu.memory_space<vmem>>, vector<1x128xf32>,
    return
  }
  func.func @transform_0(%arg0: i32) -> (i32, i32) {
    %c0_i32 = arith.constant 0 : i32
    %c0_i32_0 = arith.constant 0 : i32
    return %c0_i32, %arg0 : i32, i32
  }
  func.func @transform_1(%arg0: i32) -> (i32, i32) {
    %c0_i32 = arith.constant 0 : i32
    %c0_i32_0 = arith.constant 0 : i32
    %c0_i32_1 = arith.constant 0 : i32
    return %c0_i32, %c0_i32_0 : i32, i32
  }
  func.func @transform_2(%arg0: i32) -> (i32, i32) {
    %c0_i32 = arith.constant 0 : i32
    %c0_i32_0 = arith.constant 0 : i32
    %c0_i32_1 = arith.constant 0 : i32
    return %c0_i32, %c0_i32_0 : i32, i32
  }
  func.func @transform_3(%arg0: i32) -> (i32, i32) {
    %c0_i32 = arith.constant 0 : i32
    %c0_i32_0 = arith.constant 0 : i32
    %c0_i32_1 = arith.constant 0 : i32
    return %c0_i32, %c0_i32_0 : i32, i32
  }
  func.func @transform_4(%arg0: i32) -> (i32, i32) {
    %c0_i32 = arith.constant 0 : i32
    %c0_i32_0 = arith.constant 0 : i32
    %c0_i32_1 = arith.constant 0 : i32
    return %c0_i32, %c0_i32_0 : i32, i32
  }
  func.func @transform_5(%arg0: i32) -> (i32, i32) {
    %c0_i32 = arith.constant 0 : i32
    %c0_i32_0 = arith.constant 0 : i32
    %c0_i32_1 = arith.constant 0 : i32
    return %c0_i32, %c0_i32_0 : i32, i32
  }
  func.func @transform_6(%arg0: i32) -> (i32, i32) {
    %c0_i32 = arith.constant 0 : i32
    %c0_i32_0 = arith.constant 0 : i32
    %c0_i32_1 = arith.constant 0 : i32
    return %c0_i32, %c0_i32_0 : i32, i32
  }
  func.func @transform_7(%arg0: i32) -> (i32, i32) {
    %c0_i32 = arith.constant 0 : i32
    %c0_i32_0 = arith.constant 0 : i32
    return %c0_i32, %arg0 : i32, i32
  }
}

</mosaic_0001>

<bundles_post_ra>
// kernel: tpu_custom_call.1
= control target key start
LH: loop header
LB: loop body
LE: loop exit
PB: predicated region body
PF: predicated region fallthrough
CT: control target
= control target key end

     0   :  { %vm130_vm0 = vcmask 1041408   ;;  %vm117_vm1 = vcmask 162816   ;;  %v559_v6 = vmov 0   ;;  %s726_s0 = inlined_call_operand.vmem [shape: bf16[20,128], index: 0, kind: input, shape index: {}]   ;;  %s727_s1 = inlined_call_operand.vmem [shape: bf16[64,20], index: 1, kind: input, shape index: {}]   ;;  %s728_s2 = inlined_call_operand.vmem [shape: f32[64,1], index: 2, kind: input, shape index: {}]   ;;  %s729_s3 = inlined_call_operand.vmem [shape: bf16[64,64], index: 3, kind: input, shape index: {}]   ;;  %s730_s4 = inlined_call_operand.vmem [shape: f32[64,1], index: 4, kind: input, shape index: {}]   ;;  %s731_s5 = inlined_call_operand.vmem [shape: f32[64,1], index: 5, kind: input, shape index: {}]   ;;  %s732_s6 = inlined_call_operand.<no memory space> [shape: f32[1,1], index: 6, kind: input, shape index: {}]   ;;  %s733_s7 = inlined_call_operand.hbm [shape: f32[1,128], index: 7, kind: output, shape index: {}]  }
   0x1   :  { %v525_v0 = vld [vmem:[%s726_s0] sm:$0xff]   ;;  %v526_v1 = vld [vmem:[%s726_s0 + $0x8] ss:$0 sps:$4 sm:$0x33]   ;;  %523 = vset.pattern.permute.xlu0 %v559_v6  ;;  %524 = vset.pattern.permute.xlu1 %v559_v6  ;;  %v42_v7 = vld [vmem:[%s728_s2 + $0x10] sm:$0xff] }
   0x2   :  { %v527_v2 = vld [vmem:[%s727_s1] sm:$0xff]   ;;  %492 = vmatprep.subr.bf16.mxu0 %v525_v0  ;;  %v132_v3 = vsel %vm130_vm0, %v526_v1, 0  ;;  %v528_v5 = vld [vmem:[%s727_s1 + $0x8] sm:$0xff]   ;;  %v529_v8 = vld [vmem:[%s727_s1 + $0x10] sm:$0xff]   ;;  %60 = vperm.xlu1 %524, %v42_v7  }
   0x3   :  { %493 = vmatpush3.bf16.msra.mxu0 %v525_v0  ;;  %496 = vmatprep.mubr.msk.bf16.mxu0 %vm117_vm1, %v527_v2  ;;  %v40_v4 = vld [vmem:[%s728_s2] sm:$0xff]  ;;  %v41_v9 = vld [vmem:[%s728_s2 + $0x8] sm:$0xff]  ;;  %v43_v10 = vld [vmem:[%s728_s2 + $0x18] sm:$0xff] }
   0x4   :  { %520 = vmatprep.subr.msk.bf16.mxu0 %vm130_vm0, %v526_v1  ;;  %50 = vperm.xlu0 %523, %v40_v4   ;;  %v44_v11 = vld [vmem:[%s728_s2 + $0x20] sm:$0xff]  ;;  %v530_v12 = vld [vmem:[%s727_s1 + $0x18] sm:$0xff]   ;;  %v45_v13 = vld [vmem:[%s728_s2 + $0x28] sm:$0xff] }
   0x5   :  { %v46_v14 = vld [vmem:[%s728_s2 + $0x30] sm:$0xff] }
   0x6   :  { %65 = vperm.xlu1 %524, %v43_v10  }
   0x7   :  { %495 = vmatpush3.bf16.msra.mxu0 %v132_v3 }
   0x8   :  { %55 = vperm.xlu0 %523, %v41_v9  }
   0xa   :  { %497 = vmatmul.mubr.msk.bf16.vlgmr.msra.gmra.mrb[0].mxu0 %vm117_vm1, %v528_v5  ;;  %75 = vperm.xlu1 %524, %v45_v13  }
   0xb   :  { %500 = vmatprep.mubr.msk.bf16.mxu0 %vm117_vm1, %v529_v8 }
   0xc   :  { %70 = vperm.xlu0 %523, %v44_v11  }
   0xd   :  { %13 = vsyncpa [#allocation4], 0  ;;  %v47_v15 = vld [vmem:[%s728_s2 + $0x38] sm:$0xff]  ;;  %v219_v16 = vld [vmem:[%s730_s4] sm:$0xff]  ;;  %vm287_vm2 = vcmask 523264   ;;  %s560_s15 = smov [#allocation3]  }
   0xe   :  { %85 = vperm.xlu1 %524, %v47_v15   ;;  %v220_v17 = vld [vmem:[%s730_s4 + $0x8] sm:$0xff]  ;;  %v221_v18 = vld [vmem:[%s730_s4 + $0x10] sm:$0xff]  ;;  %v222_v19 = vld [vmem:[%s730_s4 + $0x18] sm:$0xff]  ;;  %s452_s16 = sshll.u32 %s560_s15, 4  ;;  %s453_s16 = int_to_ptr.vmem [resolvable:$true] %s452_s16 }
   0xf   :  { %v373_v20 = vld [vmem:[%s731_s5] sm:$0xff]  ;;  %v374_v21 = vld [vmem:[%s731_s5 + $0x8] sm:$0xff]  ;;  %v375_v23 = vld [vmem:[%s731_s5 + $0x10] sm:$0xff]  ;;  %s535_s17 = scalar_lea.vmem %s453_s16, 16  ;;  %s539_s18 = scalar_lea.vmem %s453_s16, 32 }
  0x10   :  { %80 = vperm.xlu0 %523, %v46_v14   ;;  %v223_v22 = vld [vmem:[%s730_s4 + $0x20] sm:$0xff]  ;;  %v224_v24 = vld [vmem:[%s730_s4 + $0x28] sm:$0xff]  ;;  %v376_v25 = vld [vmem:[%s731_s5 + $0x18] sm:$0xff]  ;;  %p536_p0 = scmp.ne.s32.totalorder %s453_s16, %s535_s17  ;;  %p540_p1 = scmp.lt.s32.totalorder %s453_s16, %s453_s16 }
  0x11   :  { %v225_v26 = vld [vmem:[%s730_s4 + $0x30] sm:$0xff]  ;;  %v377_v27 = vld [vmem:[%s731_s5 + $0x20] sm:$0xff]  ;;  %v226_v28 = vld [vmem:[%s730_s4 + $0x38] sm:$0xff]  ;;  %p541_p2 = scmp.lt.s32.totalorder %s539_s18, %s535_s17 }
  0x12   :  { %501 = vmatmul.mubr.msk.bf16.gmra.mrb[4].mxu0 %vm117_vm1, %v530_v12  ;;  %234 = vperm.xlu1 %524, %v220_v17   ;;  %v378_v29 = vld [vmem:[%s731_s5 + $0x28] sm:$0xff]  ;;  %v379_v30 = vld [vmem:[%s731_s5 + $0x30] sm:$0xff]  ;;  %v380_v31 = vld [vmem:[%s731_s5 + $0x38] sm:$0xff] }
  0x13   :  { %v531_v32 = vld [vmem:[%s729_s3] sm:$0xff]   ;;  %v532_v5 = vld [vmem:[%s729_s3 + $0x8] sm:$0xff]   ;;  %v533_v6 = vld [vmem:[%s729_s3 + $0x10] sm:$0xff]   ;;  %p542_p3 = por %p541_p2, %p540_p1 }
  0x14   :  { %229 = vperm.xlu0 %523, %v219_v16   ;;  %512 = vmatprep.mubr.msk.bf16.mxu1 %vm287_vm2, %v531_v32  ;;  %v534_v7 = vld [vmem:[%s729_s3 + $0x18] sm:$0xff]  }
  0x15   :  { %p543_p4 = pnand %p542_p3, %p536_p0 }
  0x16   :  { %244 = vperm.xlu1 %524, %v222_v19  }
  0x18   :  { %239 = vperm.xlu0 %523, %v221_v18  }
  0x1a   :  { %388 = vperm.xlu1 %524, %v374_v21  }
  0x1c   :  { %383 = vperm.xlu0 %523, %v373_v20  }
  0x1e   :  { %393 = vperm.xlu1 %524, %v375_v23  }
  0x20   :  { %249 = vperm.xlu0 %523, %v223_v22  }
  0x22   :  { %398 = vperm.xlu1 %524, %v376_v25  }
  0x24   :  { %254 = vperm.xlu0 %523, %v224_v24  }
  0x26   :  { %403 = vperm.xlu1 %524, %v377_v27  }
  0x28   :  { %259 = vperm.xlu0 %523, %v225_v26  }
  0x2a   :  { %408 = vperm.xlu1 %524, %v378_v29  }
  0x2c   :  { %264 = vperm.xlu0 %523, %v226_v28  }
  0x2e   :  { %418 = vperm.xlu1 %524, %v380_v31  }
  0x30   :  { %413 = vperm.xlu0 %523, %v379_v30  }
  0x81   :  { %v61_v34 = vpop.permute.xlu1 %60 }
  0x83   :  { %v51_v33 = vpop.permute.xlu0 %50 }
  0x85   :  { %v66_v36 = vpop.permute.xlu1 %65 }
  0x87   :  { %v56_v35 = vpop.permute.xlu0 %55 }
  0x89   :  { %v76_v45 = vpop.permute.xlu1 %75 }
  0x8b   :  { %v71_v40 = vpop.permute.xlu0 %70 }
  0x8d   :  { %v86_v57 = vpop.permute.xlu1 %85 }
  0x8f   :  { %v81_v52 = vpop.permute.xlu0 %80 }
  0x91   :  { %v235_v9 = vpop.permute.xlu1 %234 }
  0x93   :  { %v230_v8 = vpop.permute.xlu0 %229 }
  0x95   :  { %v245_v11 = vpop.permute.xlu1 %244 }
  0x97   :  { %v240_v10 = vpop.permute.xlu0 %239 }
  0x99   :  { %v389_v13 = vpop.permute.xlu1 %388 }
  0x9b   :  { %v384_v12 = vpop.permute.xlu0 %383 }
  0x9d   :  { %v394_v15 = vpop.permute.xlu1 %393 }
  0x9f   :  { %v250_v14 = vpop.permute.xlu0 %249 }
  0xa1   :  { %v399_v18 = vpop.permute.xlu1 %398 }
  0xa3   :  { %v255_v16 = vpop.permute.xlu0 %254 }
  0xa5   :  { %v404_v30 = vpop.permute.xlu1 %403 }
  0xa7   :  { %v260_v27 = vpop.permute.xlu0 %259 }
  0xdd   :  { %v498_v37 = vpop.f32.mrb[0].mxu0 }
  0xde   :  { %v177_v38 = vadd.f32 %v498_v37, %v61_v34  ;;  %v168_v39 = vpop.f32.mrb[1].mxu0 }
  0xdf   :  { %v169_v41 = vadd.f32 %v168_v39, %v51_v33  ;;  %v499_v42 = vpop.f32.mrb[2].mxu0 }
  0xe0   :  { %v180_v43 = vadd.f32 %v499_v42, %v66_v36  ;;  %v171_v44 = vpop.f32.mrb[3].mxu0  ;;  %v201_v47 = vmax.f32 %v177_v38, 0.0 }
  0xe1   :  { %v172_v46 = vadd.f32 %v171_v44, %v56_v35  ;;  %v199_v49 = vmax.f32 %v169_v41, 0.0  ;;  %v265_v41 = vpop.permute.xlu0 %264 }
  0xe2   :  { %v202_v48 = vmax.f32 %v180_v43, 0.0 }
  0xe3   :  { %v200_v50 = vmax.f32 %v172_v46, 0.0 }
  0xe4   :  { %v216_v51 = vpack.c.bf16 %v202_v48, %v201_v47  ;;  %v409_v48 = vpop.permute.xlu1 %408 }
  0xe5   :  { %v502_v53 = vpop.f32.mrb[4].mxu0  ;;  %v215_v54 = vpack.c.bf16 %v200_v50, %v199_v49 }
  0xe6   :  { %v193_v55 = vadd.f32 %v502_v53, %v81_v52  ;;  %v184_v56 = vpop.f32.mrb[5].mxu0 }
  0xe7   :  { %v185_v58 = vadd.f32 %v184_v56, %v71_v40  ;;  %v503_v59 = vpop.f32.mrb[6].mxu0  ;;  %504 = vmatprep.subr.bf16.mxu1 %v215_v54  ;;  %v414_v56 = vpop.permute.xlu0 %413 }
  0xe8   :  { %v196_v60 = vadd.f32 %v503_v59, %v86_v57  ;;  %v187_v61 = vpop.f32.mrb[7].mxu0  ;;  %505 = vmatpush3.bf16.msra.mxu1 %v215_v54  ;;  %v205_v63 = vmax.f32 %v193_v55, 0.0  ;;  %v419_v59 = vpop.permute.xlu1 %418 }
  0xe9   :  { %v188_v62 = vadd.f32 %v187_v61, %v76_v45  ;;  %506 = vmatprep.subr.bf16.mxu1 %v216_v51  ;;  %v203_v1 = vmax.f32 %v185_v58, 0.0 }
  0xea   :  { %v206_v0 = vmax.f32 %v196_v60, 0.0 }
  0xeb   :  { %v204_v2 = vmax.f32 %v188_v62, 0.0 }
  0xec   :  { %v218_v3 = vpack.c.bf16 %v206_v0, %v205_v63  ;;  %507 = vmatpush3.bf16.msra.mxu1 %v216_v51 }
  0xed   :  { %v217_v4 = vpack.c.bf16 %v204_v2, %v203_v1 }
  0xef   :  { %508 = vmatprep.subr.bf16.mxu1 %v217_v4 }
  0xf0   :  { %509 = vmatpush3.bf16.msra.mxu1 %v217_v4  ;;  %v443_v4 = vstv %s732_s6 }
  0xf1   :  { %510 = vmatprep.subr.bf16.mxu1 %v218_v3 }
  0xf4   :  { %511 = vmatpush3.bf16.msra.mxu1 %v218_v3 }
  0xf7   :  { %513 = vmatmul.mubr.msk.bf16.vlgmr.msra.gmra.mrb[0].mxu1 %vm287_vm2, %v532_v5 }
  0xf8   :  { %516 = vmatprep.mubr.msk.bf16.mxu1 %vm287_vm2, %v533_v6 }
  0xff   :  { %517 = vmatmul.mubr.msk.bf16.gmra.mrb[4].mxu1 %vm287_vm2, %v534_v7 }
 0x1ca   :  { %v514_v17 = vpop.f32.mrb[0].mxu1 }
 0x1cb   :  { %v334_v19 = vpop.f32.mrb[1].mxu1  ;;  %v343_v20 = vadd.f32 %v514_v17, %v240_v10 }
 0x1cc   :  { %v335_v21 = vadd.f32 %v334_v19, %v230_v8  ;;  %v515_v22 = vpop.f32.mrb[2].mxu1 }
 0x1cd   :  { %v346_v23 = vadd.f32 %v515_v22, %v245_v11  ;;  %v337_v24 = vpop.f32.mrb[3].mxu1  ;;  %v367_v28 = vmax.f32 %v343_v20, 0.0 }
 0x1ce   :  { %v365_v25 = vmax.f32 %v335_v21, 0.0  ;;  %v338_v26 = vadd.f32 %v337_v24, %v235_v9 }
 0x1cf   :  { %v368_v31 = vmax.f32 %v346_v23, 0.0  ;;  %v423_v36 = vmul.f32 %v394_v15, %v367_v28 }
 0x1d0   :  { %v366_v29 = vmax.f32 %v338_v26, 0.0  ;;  %v421_v32 = vmul.f32 %v384_v12, %v365_v25 }
 0x1d1   :  { %v424_v42 = vmul.f32 %v399_v18, %v368_v31 }
 0x1d2   :  { %v422_v33 = vmul.f32 %v389_v13, %v366_v29  ;;  %v518_v34 = vpop.f32.mrb[4].mxu1 }
 0x1d3   :  { %v350_v35 = vpop.f32.mrb[5].mxu1  ;;  %v359_v38 = vadd.f32 %v518_v34, %v260_v27 }
 0x1d4   :  { %v429_v37 = vadd.f32 %v422_v33, %v421_v32  ;;  %v351_v39 = vadd.f32 %v350_v35, %v250_v14  ;;  %v519_v40 = vpop.f32.mrb[6].mxu1 }
 0x1d5   :  { %v353_v43 = vpop.f32.mrb[7].mxu1  ;;  %v362_v46 = vadd.f32 %v519_v40, %v265_v41  ;;  %v371_v49 = vmax.f32 %v359_v38, 0.0 }
 0x1d6   :  { %v430_v44 = vadd.f32 %v429_v37, %v423_v36  ;;  %v369_v45 = vmax.f32 %v351_v39, 0.0  ;;  %v354_v47 = vadd.f32 %v353_v43, %v255_v16 }
 0x1d7   :  { %v372_v54 = vmax.f32 %v362_v46, 0.0  ;;  %v427_v57 = vmul.f32 %v414_v56, %v371_v49 }
 0x1d8   :  { %v425_v50 = vmul.f32 %v404_v30, %v369_v45  ;;  %v431_v51 = vadd.f32 %v430_v44, %v424_v42  ;;  %v370_v52 = vmax.f32 %v354_v47, 0.0 }
 0x1d9   :  { %v428_v60 = vmul.f32 %v419_v59, %v372_v54 }
 0x1da   :  { %v432_v53 = vadd.f32 %v431_v51, %v425_v50  ;;  %v426_v55 = vmul.f32 %v409_v48, %v370_v52 }
 0x1dc   :  { %v433_v58 = vadd.f32 %v432_v53, %v426_v55 }
 0x1de   :  { %v434_v61 = vadd.f32 %v433_v58, %v427_v57 }
 0x1e0   :  { %v435_v62 = vadd.f32 %v434_v61, %v428_v60 }
 0x1e2   :  { %v436_v63 = vrot.slane %v435_v62, 4 }
 0x1e4   :  { %v437_v0 = vadd.f32 %v436_v63, %v435_v62 }
 0x1e6   :  { %v438_v1 = vrot.slane %v437_v0, 2 }
 0x1e8   :  { %v439_v2 = vadd.f32 %v438_v1, %v437_v0 }
 0x1ea   :  { %v440_v3 = vrot.slane %v439_v2, 1 }
 0x1ec   :  { %v441_v5 = vadd.f32 %v440_v3, %v439_v2 }
 0x1ee   :  { %v444_v6 = vadd.f32 %v443_v4, %v441_v5 }
 0x1f0   :  { %445 = vst [vmem:[#allocation3] sm:$0x1] %v444_v6 }
 0x1f1   :  { %546 = shalt.err (!%p543_p4)
}
 0x1f2   :  { %s547_s21 = scalar_lea.hbm %s733_s7, 16 }
 0x1f3   :  { %p548_p5 = scmp.ne.s32.totalorder %s733_s7, %s547_s21  ;;  %p551_p6 = scmp.lt.u32.totalorder %s547_s21, %s733_s7 }
 0x1f5   :  { %p553_p7 = pnand %p551_p6, %p548_p5 }
 0x1f7   :  { %556 = shalt.err (!%p553_p7)
}
 0x1f8   :  { %455 = dma.vmem_to_hbm [thread:$0]  %s453_s16, 16, %s733_s7, [#allocation4]  }
 0x1f9   :  { %557 = dma.done.wait [#allocation4], 16  }
 0x1fa   :  { %558 = vsyncadd [#allocation4], 4294967280 }
 0x1fb   :  { %459 = vsyncpa [#allocation4], 1 }

</bundles_post_ra>
